<compile_context>
chip_gen: v7x
topology: tpu7x:2x2x1
jax: 0.10.0
libtpu: 0.0.40
codegen_flags: <defaults>
</compile_context>

<pallas_src>
import functools

import jax
import jax.numpy as jnp
from jax.experimental import pallas as pl
from jax.experimental.pallas import tpu as pltpu


def _round_up(x, m):
    return (x + m - 1) // m * m


def _mlp5_kernel(x_ref, ws_ref, bs_ref, w1_ref, b1_ref, w2_ref, b2_ref, o_ref):
    # x_ref:  (TB, 5)        -- columns are [E, F, G, H, I]
    # ws_ref: (5, 64)        -- row j = weight of j-th Linear(1, 64)
    # bs_ref: (5, 64)        -- row j = bias   of j-th Linear(1, 64)
    # w1_ref: (320, 64), b1_ref: (1, 64)
    # w2_ref: (64, OUT_PAD), b2_ref: (1, OUT_PAD)   (zero-padded to 128 lanes)
    x = x_ref[...]
    ws = ws_ref[...]
    bs = bs_ref[...]

    tb = x.shape[0]
    acc = jnp.zeros((tb, 64), jnp.float32)
    # Layer 1 fused into fc1's K-loop (static 5-way unroll): the per-scalar
    # Linear(1,64)+ReLU is a VPU broadcast mul+add+max; the MXU only sees the
    # dense (TB,64) @ (64,64) partial products.  No (TB,320) intermediate.
    for j in range(5):
        h0j = jnp.maximum(x[:, j:j + 1] * ws[j] + bs[j], 0.0)       # (TB, 64)
        acc = acc + jnp.dot(h0j, w1_ref[j * 64:(j + 1) * 64, :],
                            preferred_element_type=jnp.float32)

    h1 = jnp.maximum(acc + b1_ref[...], 0.0)                        # (TB, 64)
    # fc2 with lane-dense (padded) output.
    o_ref[...] = (jnp.dot(h1, w2_ref[...], preferred_element_type=jnp.float32)
                  + b2_ref[...]).astype(o_ref.dtype)


@functools.partial(jax.jit, static_argnames=("output_dim", "block_b"))
def mlp_model5_forward(params, A, B, C, D, E, F, G, H, I, *,
                       output_dim, block_b=512):
    del A, B, C, D  # unused, same as the PyTorch forward
    bsz = E.shape[0]

    # --- glue: pack the five (B,1) inputs into (B,5) ----------------------
    x = jnp.concatenate([E, F, G, H, I], axis=1).astype(jnp.float32)  # (B, 5)

    # --- batch tiling: 8-aligned tile, pad batch to a multiple of it ------
    tb = min(int(block_b), _round_up(bsz, 8))
    tb = _round_up(tb, 8)
    b_pad = _round_up(bsz, tb)
    if b_pad != bsz:
        x = jnp.pad(x, ((0, b_pad - bsz), (0, 0)))

    # --- params (no block-diag w_big; lane-dense padded output) -----------
    ws = params["w_small"].astype(jnp.float32)            # (5, 64)
    bs = params["b_small"].astype(jnp.float32)            # (5, 64)
    w1 = params["w1"].astype(jnp.float32)                 # (320, 64)
    b1 = params["b1"].reshape(1, 64).astype(jnp.float32)  # (1, 64)

    out_pad = _round_up(max(output_dim, 1), 128)          # lane-dense store
    w2 = jnp.zeros((64, out_pad), jnp.float32).at[:, :output_dim].set(
        params["w2"].astype(jnp.float32))
    b2 = jnp.zeros((1, out_pad), jnp.float32).at[:, :output_dim].set(
        params["b2"].reshape(1, output_dim).astype(jnp.float32))

    grid = (pl.cdiv(b_pad, tb),)

    resident = lambda i: (0, 0)   # weights/biases stay in VMEM across steps

    out = pl.pallas_call(
        _mlp5_kernel,
        out_shape=jax.ShapeDtypeStruct((b_pad, out_pad), jnp.float32),
        grid=grid,
        in_specs=[
            pl.BlockSpec((tb, 5), lambda i: (i, 0)),      # streamed input tile
            pl.BlockSpec((5, 64), resident),
            pl.BlockSpec((5, 64), resident),
            pl.BlockSpec((320, 64), resident),
            pl.BlockSpec((1, 64), resident),
            pl.BlockSpec((64, out_pad), resident),
            pl.BlockSpec((1, out_pad), resident),
        ],
        out_specs=pl.BlockSpec((tb, out_pad), lambda i: (i, 0)),
        compiler_params=pltpu.CompilerParams(
            dimension_semantics=("parallel",),            # megacore on v7x
            vmem_limit_bytes=32 * 1024 * 1024),           # safe on v5e/v6e/v7x
    )(x, ws, bs, w1, b1, w2, b2)

    return out[:bsz, :output_dim]


def init_params(key, output_dim):
    """Deterministic init mimicking nn.Linear's U(-1/sqrt(fan_in), 1/sqrt(fan_in))."""
    ks = jax.random.split(key, 8)

    def uniform(k, shape, fan_in):
        bound = 1.0 / jnp.sqrt(float(fan_in))
        return jax.random.uniform(k, shape, jnp.float32, -bound, bound)

    return {
        # five Linear(1, 64) layers stacked: row j = layer j's weight/bias
        "w_small": uniform(ks[0], (5, 64), 1),
        "b_small": uniform(ks[1], (5, 64), 1),
        # fc1: Linear(320, 64)  (stored as (in, out) for x @ W)
        "w1": uniform(ks[2], (320, 64), 320),
        "b1": uniform(ks[3], (64,), 320),
        # fc2: Linear(64, output_dim)
        "w2": uniform(ks[4], (64, output_dim), 64),
        "b2": uniform(ks[5], (output_dim,), 64),
    }


def _reference_forward(params, E, F, G, H, I, output_dim):
    """Pure-JAX reference of the PyTorch forward, for a sanity check."""
    ws, bs = params["w_small"], params["b_small"]
    parts = []
    for j, inp in enumerate([E, F, G, H, I]):
        parts.append(jnp.maximum(inp @ ws[j:j + 1] + bs[j], 0.0))
    x_all = jnp.concatenate(parts, axis=1)                       # (B, 320)
    h = jnp.maximum(x_all @ params["w1"] + params["b1"], 0.0)    # (B, 64)
    return h @ params["w2"] + params["b2"]                       # (B, out)


if __name__ == "__main__":
    batch = 8
    output_dim = 8

    key = jax.random.PRNGKey(0)
    k_param, k_in = jax.random.split(key)
    params = init_params(k_param, output_dim)

    kin = jax.random.split(k_in, 9)
    # A..D are unused by the forward but part of its signature.
    A = jax.random.normal(kin[0], (batch, 1), jnp.float32)
    Bi = jax.random.normal(kin[1], (batch, 1), jnp.float32)
    C = jax.random.normal(kin[2], (batch, 1), jnp.float32)
    D = jax.random.normal(kin[3], (batch, 1), jnp.float32)
    E = jax.random.normal(kin[4], (batch, 1), jnp.float32)
    F = jax.random.normal(kin[5], (batch, 1), jnp.float32)
    G = jax.random.normal(kin[6], (batch, 1), jnp.float32)
    H = jax.random.normal(kin[7], (batch, 1), jnp.float32)
    I = jax.random.normal(kin[8], (batch, 1), jnp.float32)

    out = mlp_model5_forward(params, A, Bi, C, D, E, F, G, H, I,
                             output_dim=output_dim)
    out = jax.block_until_ready(out)

    ref = _reference_forward(params, E, F, G, H, I, output_dim)
    assert out.shape == (batch, output_dim)
    assert jnp.allclose(out, ref, atol=1e-4, rtol=1e-4), "mismatch vs reference"

    print("KERNEL_OK")
</pallas_src>

<mosaic_0001>
module attributes {stable_mosaic.version = 11 : i64} {
  func.func @_mlp5_kernel(%arg0: i32, %arg1: memref<8x5xf32, #tpu.memory_space<vmem>>, %arg2: memref<5x64xf32, #tpu.memory_space<vmem>>, %arg3: memref<5x64xf32, #tpu.memory_space<vmem>>, %arg4: memref<320x64xf32, #tpu.memory_space<vmem>>, %arg5: memref<1x64xf32, #tpu.memory_space<vmem>>, %arg6: memref<64x128xf32, #tpu.memory_space<vmem>>, %arg7: memref<1x128xf32, #tpu.memory_space<vmem>>, %arg8: memref<8x128xf32, #tpu.memory_space<vmem>>) attributes {dimension_semantics = [#tpu.dimension_semantics<parallel>], iteration_bounds = array<i64: 1>, scalar_prefetch = 0 : i64, scratch_operands = 0 : i64, tpu.core_type = #tpu.core_type<tc>, window_params = [{transform_indices = @transform_0, window_bounds = array<i64: 8, 5>}, {pipeline_mode = #tpu.pipeline_mode<synchronous>, transform_indices = @transform_1, window_bounds = array<i64: 5, 64>}, {pipeline_mode = #tpu.pipeline_mode<synchronous>, transform_indices = @transform_2, window_bounds = array<i64: 5, 64>}, {pipeline_mode = #tpu.pipeline_mode<synchronous>, transform_indices = @transform_3, window_bounds = array<i64: 320, 64>}, {pipeline_mode = #tpu.pipeline_mode<synchronous>, transform_indices = @transform_4, window_bounds = array<i64: 1, 64>}, {pipeline_mode = #tpu.pipeline_mode<synchronous>, transform_indices = @transform_5, window_bounds = array<i64: 64, 128>}, {pipeline_mode = #tpu.pipeline_mode<synchronous>, transform_indices = @transform_6, window_bounds = array<i64: 1, 128>}, {transform_indices = @transform_7, window_bounds = array<i64: 8, 128>}]} {
    %c0 = arith.constant 0 : index
    %c0_0 = arith.constant 0 : index
    %0 = vector.load %arg1[%c0, %c0_0] : memref<8x5xf32, #tpu.memory_space<vmem>>, vector<8x5xf32>
    %c0_1 = arith.constant 0 : index
    %c0_2 = arith.constant 0 : index
    %1 = vector.load %arg2[%c0_1, %c0_2] : memref<5x64xf32, #tpu.memory_space<vmem>>, vector<5x64xf32>
    %c0_3 = arith.constant 0 : index
    %c0_4 = arith.constant 0 : index
    %2 = vector.load %arg3[%c0_3, %c0_4] : memref<5x64xf32, #tpu.memory_space<vmem>>, vector<5x64xf32>
    %cst = arith.constant 0.000000e+00 : f32
    %3 = vector.broadcast %cst : f32 to vector<8x64xf32>
    %4 = vector.extract_strided_slice %0 {offsets = [0, 0], sizes = [8, 1], strides = [1, 1]} : vector<8x5xf32> to vector<8x1xf32>
    %5 = vector.extract_strided_slice %1 {offsets = [0, 0], sizes = [1, 64], strides = [1, 1]} : vector<5x64xf32> to vector<1x64xf32>
    %6 = vector.shape_cast %5 : vector<1x64xf32> to vector<64xf32>
    %7 = vector.shape_cast %6 : vector<64xf32> to vector<1x64xf32>
    %8 = vector.broadcast %4 : vector<8x1xf32> to vector<8x64xf32>
    %9 = vector.broadcast %7 : vector<1x64xf32> to vector<8x64xf32>
    %10 = arith.mulf %8, %9 : vector<8x64xf32>
    %11 = vector.extract_strided_slice %2 {offsets = [0, 0], sizes = [1, 64], strides = [1, 1]} : vector<5x64xf32> to vector<1x64xf32>
    %12 = vector.shape_cast %11 : vector<1x64xf32> to vector<64xf32>
    %13 = vector.shape_cast %12 : vector<64xf32> to vector<1x64xf32>
    %14 = vector.broadcast %13 : vector<1x64xf32> to vector<8x64xf32>
    %15 = arith.addf %10, %14 : vector<8x64xf32>
    %cst_5 = arith.constant 0.000000e+00 : f32
    %16 = vector.broadcast %cst_5 : f32 to vector<8x64xf32>
    %17 = arith.maximumf %15, %16 : vector<8x64xf32>
    %c0_6 = arith.constant 0 : index
    %c0_7 = arith.constant 0 : index
    %18 = vector.load %arg4[%c0_6, %c0_7] : memref<320x64xf32, #tpu.memory_space<vmem>>, vector<64x64xf32>
    %cst_8 = arith.constant dense<0.000000e+00> : vector<8x64xf32>
    %19 = tpu.matmul %17, %18, %cst_8 {dimension_numbers = #tpu.dot_dimension_numbers<[1], [0], [0], [1], [0, 0, 1, 1], [], []>} : vector<8x64xf32>, vector<64x64xf32>, vector<8x64xf32> -> vector<8x64xf32>
    %20 = arith.addf %3, %19 : vector<8x64xf32>
    %21 = vector.extract_strided_slice %0 {offsets = [0, 1], sizes = [8, 1], strides = [1, 1]} : vector<8x5xf32> to vector<8x1xf32>
    %22 = vector.extract_strided_slice %1 {offsets = [1, 0], sizes = [1, 64], strides = [1, 1]} : vector<5x64xf32> to vector<1x64xf32>
    %23 = vector.shape_cast %22 : vector<1x64xf32> to vector<64xf32>
    %24 = vector.shape_cast %23 : vector<64xf32> to vector<1x64xf32>
    %25 = vector.broadcast %21 : vector<8x1xf32> to vector<8x64xf32>
    %26 = vector.broadcast %24 : vector<1x64xf32> to vector<8x64xf32>
    %27 = arith.mulf %25, %26 : vector<8x64xf32>
    %28 = vector.extract_strided_slice %2 {offsets = [1, 0], sizes = [1, 64], strides = [1, 1]} : vector<5x64xf32> to vector<1x64xf32>
    %29 = vector.shape_cast %28 : vector<1x64xf32> to vector<64xf32>
    %30 = vector.shape_cast %29 : vector<64xf32> to vector<1x64xf32>
    %31 = vector.broadcast %30 : vector<1x64xf32> to vector<8x64xf32>
    %32 = arith.addf %27, %31 : vector<8x64xf32>
    %cst_9 = arith.constant 0.000000e+00 : f32
    %33 = vector.broadcast %cst_9 : f32 to vector<8x64xf32>
    %34 = arith.maximumf %32, %33 : vector<8x64xf32>
    %c64 = arith.constant 64 : index
    %c0_10 = arith.constant 0 : index
    %35 = vector.load %arg4[%c64, %c0_10] : memref<320x64xf32, #tpu.memory_space<vmem>>, vector<64x64xf32>
    %cst_11 = arith.constant dense<0.000000e+00> : vector<8x64xf32>
    %36 = tpu.matmul %34, %35, %cst_11 {dimension_numbers = #tpu.dot_dimension_numbers<[1], [0], [0], [1], [0, 0, 1, 1], [], []>} : vector<8x64xf32>, vector<64x64xf32>, vector<8x64xf32> -> vector<8x64xf32>
    %37 = arith.addf %20, %36 : vector<8x64xf32>
    %38 = vector.extract_strided_slice %0 {offsets = [0, 2], sizes = [8, 1], strides = [1, 1]} : vector<8x5xf32> to vector<8x1xf32>
    %39 = vector.extract_strided_slice %1 {offsets = [2, 0], sizes = [1, 64], strides = [1, 1]} : vector<5x64xf32> to vector<1x64xf32>
    %40 = vector.shape_cast %39 : vector<1x64xf32> to vector<64xf32>
    %41 = vector.shape_cast %40 : vector<64xf32> to vector<1x64xf32>
    %42 = vector.broadcast %38 : vector<8x1xf32> to vector<8x64xf32>
    %43 = vector.broadcast %41 : vector<1x64xf32> to vector<8x64xf32>
    %44 = arith.mulf %42, %43 : vector<8x64xf32>
    %45 = vector.extract_strided_slice %2 {offsets = [2, 0], sizes = [1, 64], strides = [1, 1]} : vector<5x64xf32> to vector<1x64xf32>
    %46 = vector.shape_cast %45 : vector<1x64xf32> to vector<64xf32>
    %47 = vector.shape_cast %46 : vector<64xf32> to vector<1x64xf32>
    %48 = vector.broadcast %47 : vector<1x64xf32> to vector<8x64xf32>
    %49 = arith.addf %44, %48 : vector<8x64xf32>
    %cst_12 = arith.constant 0.000000e+00 : f32
    %50 = vector.broadcast %cst_12 : f32 to vector<8x64xf32>
    %51 = arith.maximumf %49, %50 : vector<8x64xf32>
    %c128 = arith.constant 128 : index
    %c0_13 = arith.constant 0 : index
    %52 = vector.load %arg4[%c128, %c0_13] : memref<320x64xf32, #tpu.memory_space<vmem>>, vector<64x64xf32>
    %cst_14 = arith.constant dense<0.000000e+00> : vector<8x64xf32>
    %53 = tpu.matmul %51, %52, %cst_14 {dimension_numbers = #tpu.dot_dimension_numbers<[1], [0], [0], [1], [0, 0, 1, 1], [], []>} : vector<8x64xf32>, vector<64x64xf32>, vector<8x64xf32> -> vector<8x64xf32>
    %54 = arith.addf %37, %53 : vector<8x64xf32>
    %55 = vector.extract_strided_slice %0 {offsets = [0, 3], sizes = [8, 1], strides = [1, 1]} : vector<8x5xf32> to vector<8x1xf32>
    %56 = vector.extract_strided_slice %1 {offsets = [3, 0], sizes = [1, 64], strides = [1, 1]} : vector<5x64xf32> to vector<1x64xf32>
    %57 = vector.shape_cast %56 : vector<1x64xf32> to vector<64xf32>
    %58 = vector.shape_cast %57 : vector<64xf32> to vector<1x64xf32>
    %59 = vector.broadcast %55 : vector<8x1xf32> to vector<8x64xf32>
    %60 = vector.broadcast %58 : vector<1x64xf32> to vector<8x64xf32>
    %61 = arith.mulf %59, %60 : vector<8x64xf32>
    %62 = vector.extract_strided_slice %2 {offsets = [3, 0], sizes = [1, 64], strides = [1, 1]} : vector<5x64xf32> to vector<1x64xf32>
    %63 = vector.shape_cast %62 : vector<1x64xf32> to vector<64xf32>
    %64 = vector.shape_cast %63 : vector<64xf32> to vector<1x64xf32>
    %65 = vector.broadcast %64 : vector<1x64xf32> to vector<8x64xf32>
    %66 = arith.addf %61, %65 : vector<8x64xf32>
    %cst_15 = arith.constant 0.000000e+00 : f32
    %67 = vector.broadcast %cst_15 : f32 to vector<8x64xf32>
    %68 = arith.maximumf %66, %67 : vector<8x64xf32>
    %c192 = arith.constant 192 : index
    %c0_16 = arith.constant 0 : index
    %69 = vector.load %arg4[%c192, %c0_16] : memref<320x64xf32, #tpu.memory_space<vmem>>, vector<64x64xf32>
    %cst_17 = arith.constant dense<0.000000e+00> : vector<8x64xf32>
    %70 = tpu.matmul %68, %69, %cst_17 {dimension_numbers = #tpu.dot_dimension_numbers<[1], [0], [0], [1], [0, 0, 1, 1], [], []>} : vector<8x64xf32>, vector<64x64xf32>, vector<8x64xf32> -> vector<8x64xf32>
    %71 = arith.addf %54, %70 : vector<8x64xf32>
    %72 = vector.extract_strided_slice %0 {offsets = [0, 4], sizes = [8, 1], strides = [1, 1]} : vector<8x5xf32> to vector<8x1xf32>
    %73 = vector.extract_strided_slice %1 {offsets = [4, 0], sizes = [1, 64], strides = [1, 1]} : vector<5x64xf32> to vector<1x64xf32>
    %74 = vector.shape_cast %73 : vector<1x64xf32> to vector<64xf32>
    %75 = vector.shape_cast %74 : vector<64xf32> to vector<1x64xf32>
    %76 = vector.broadcast %72 : vector<8x1xf32> to vector<8x64xf32>
    %77 = vector.broadcast %75 : vector<1x64xf32> to vector<8x64xf32>
    %78 = arith.mulf %76, %77 : vector<8x64xf32>
    %79 = vector.extract_strided_slice %2 {offsets = [4, 0], sizes = [1, 64], strides = [1, 1]} : vector<5x64xf32> to vector<1x64xf32>
    %80 = vector.shape_cast %79 : vector<1x64xf32> to vector<64xf32>
    %81 = vector.shape_cast %80 : vector<64xf32> to vector<1x64xf32>
    %82 = vector.broadcast %81 : vector<1x64xf32> to vector<8x64xf32>
    %83 = arith.addf %78, %82 : vector<8x64xf32>
    %cst_18 = arith.constant 0.000000e+00 : f32
    %84 = vector.broadcast %cst_18 : f32 to vector<8x64xf32>
    %85 = arith.maximumf %83, %84 : vector<8x64xf32>
    %c256 = arith.constant 256 : index
    %c0_19 = arith.constant 0 : index
    %86 = vector.load %arg4[%c256, %c0_19] : memref<320x64xf32, #tpu.memory_space<vmem>>, vector<64x64xf32>
    %cst_20 = arith.constant dense<0.000000e+00> : vector<8x64xf32>
    %87 = tpu.matmul %85, %86, %cst_20 {dimension_numbers = #tpu.dot_dimension_numbers<[1], [0], [0], [1], [0, 0, 1, 1], [], []>} : vector<8x64xf32>, vector<64x64xf32>, vector<8x64xf32> -> vector<8x64xf32>
    %88 = arith.addf %71, %87 : vector<8x64xf32>
    %c0_21 = arith.constant 0 : index
    %c0_22 = arith.constant 0 : index
    %89 = vector.load %arg5[%c0_21, %c0_22] : memref<1x64xf32, #tpu.memory_space<vmem>>, vector<1x64xf32>
    %90 = vector.broadcast %89 : vector<1x64xf32> to vector<8x64xf32>
    %91 = arith.addf %88, %90 : vector<8x64xf32>
    %cst_23 = arith.constant 0.000000e+00 : f32
    %92 = vector.broadcast %cst_23 : f32 to vector<8x64xf32>
    %93 = arith.maximumf %91, %92 : vector<8x64xf32>
    %c0_24 = arith.constant 0 : index
    %c0_25 = arith.constant 0 : index
    %94 = vector.load %arg6[%c0_24, %c0_25] : memref<64x128xf32, #tpu.memory_space<vmem>>, vector<64x128xf32>
    %cst_26 = arith.constant dense<0.000000e+00> : vector<8x128xf32>
    %95 = tpu.matmul %93, %94, %cst_26 {dimension_numbers = #tpu.dot_dimension_numbers<[1], [0], [0], [1], [0, 0, 1, 1], [], []>} : vector<8x64xf32>, vector<64x128xf32>, vector<8x128xf32> -> vector<8x128xf32>
    %c0_27 = arith.constant 0 : index
    %c0_28 = arith.constant 0 : index
    %96 = vector.load %arg7[%c0_27, %c0_28] : memref<1x128xf32, #tpu.memory_space<vmem>>, vector<1x128xf32>
    %97 = vector.broadcast %96 : vector<1x128xf32> to vector<8x128xf32>
    %98 = arith.addf %95, %97 : vector<8x128xf32>
    %c0_29 = arith.constant 0 : index
    %c0_30 = arith.constant 0 : index
    %99 = vector.load %arg8[%c0_29, %c0_30] : memref<8x128xf32, #tpu.memory_space<vmem>>, vector<8x128xf32>
    tpu.vector_store %arg8[%c0_29, %c0_30], %98 {strides = array<i32>} : memref<8x128xf32, #tpu.memory_space<vmem>>, vector<8x128xf32>,
    return
  }
  func.func @transform_0(%arg0: i32) -> (i32, i32) {
    %c0_i32 = arith.constant 0 : i32
    %c0_i32_0 = arith.constant 0 : i32
    return %arg0, %c0_i32 : i32, i32
  }
  func.func @transform_1(%arg0: i32) -> (i32, i32) {
    %c0_i32 = arith.constant 0 : i32
    %c0_i32_0 = arith.constant 0 : i32
    %c0_i32_1 = arith.constant 0 : i32
    return %c0_i32, %c0_i32_0 : i32, i32
  }
  func.func @transform_2(%arg0: i32) -> (i32, i32) {
    %c0_i32 = arith.constant 0 : i32
    %c0_i32_0 = arith.constant 0 : i32
    %c0_i32_1 = arith.constant 0 : i32
    return %c0_i32, %c0_i32_0 : i32, i32
  }
  func.func @transform_3(%arg0: i32) -> (i32, i32) {
    %c0_i32 = arith.constant 0 : i32
    %c0_i32_0 = arith.constant 0 : i32
    %c0_i32_1 = arith.constant 0 : i32
    return %c0_i32, %c0_i32_0 : i32, i32
  }
  func.func @transform_4(%arg0: i32) -> (i32, i32) {
    %c0_i32 = arith.constant 0 : i32
    %c0_i32_0 = arith.constant 0 : i32
    %c0_i32_1 = arith.constant 0 : i32
    return %c0_i32, %c0_i32_0 : i32, i32
  }
  func.func @transform_5(%arg0: i32) -> (i32, i32) {
    %c0_i32 = arith.constant 0 : i32
    %c0_i32_0 = arith.constant 0 : i32
    %c0_i32_1 = arith.constant 0 : i32
    return %c0_i32, %c0_i32_0 : i32, i32
  }
  func.func @transform_6(%arg0: i32) -> (i32, i32) {
    %c0_i32 = arith.constant 0 : i32
    %c0_i32_0 = arith.constant 0 : i32
    %c0_i32_1 = arith.constant 0 : i32
    return %c0_i32, %c0_i32_0 : i32, i32
  }
  func.func @transform_7(%arg0: i32) -> (i32, i32) {
    %c0_i32 = arith.constant 0 : i32
    %c0_i32_0 = arith.constant 0 : i32
    return %arg0, %c0_i32 : i32, i32
  }
}

</mosaic_0001>

<bundles_post_ra>
// kernel: mlp_model5_forward.1
= control target key start
LH: loop header
LB: loop body
LE: loop exit
PB: predicated region body
PF: predicated region fallthrough
CT: control target
= control target key end

     0   :  { %v914_v2 = vmov 1   ;;  %v915_v3 = vmov 2   ;;  %v916_v10 = vmov 0.0|0.0   ;;  %v917_v18 = vmov 0   ;;  %s1197_s0 = inlined_call_operand.vmem [shape: f32[8,5], index: 0, kind: input, shape index: {}]   ;;  %s1198_s1 = inlined_call_operand.vmem [shape: f32[5,64], index: 1, kind: input, shape index: {}]   ;;  %s1199_s2 = inlined_call_operand.vmem [shape: f32[5,64], index: 2, kind: input, shape index: {}]   ;;  %s1200_s3 = inlined_call_operand.vmem [shape: f32[320,64], index: 3, kind: input, shape index: {}]   ;;  %s1201_s4 = inlined_call_operand.vmem [shape: f32[1,64], index: 4, kind: input, shape index: {}]   ;;  %s1202_s5 = inlined_call_operand.vmem [shape: f32[64,128], index: 5, kind: input, shape index: {}]   ;;  %s1203_s6 = inlined_call_operand.vmem [shape: f32[1,128], index: 6, kind: input, shape index: {}]   ;;  %s1204_s7 = inlined_call_operand.hbm [shape: f32[8,128], index: 7, kind: output, shape index: {}]  }
   0x1   :  { %v27_v0 = vld [vmem:[%s1197_s0] sm:$0xff]  ;;  %884 = vset.pattern.permute.xlu0 %v914_v2  ;;  %886 = vset.pattern.permute.xlu1 %v915_v3  ;;  %v70_v4 = vld [vmem:[%s1200_s3 + $0x48] sm:$0xff]  ;;  %v71_v5 = vld [vmem:[%s1200_s3 + $0x50] sm:$0xff]  ;;  %v918_v19 = vmov 3  }
   0x2   :  { %v69_v1 = vld [vmem:[%s1200_s3 + $0x40] sm:$0xff]  ;;  %v72_v6 = vld [vmem:[%s1200_s3 + $0x58] sm:$0xff]  ;;  %55 = vperm.xlu0 %884, %v27_v0   ;;  %225 = vperm.xlu1 %886, %v27_v0   ;;  %v47_v9 = vld [vmem:[%s1200_s3 + $0x8] sm:$0xff] }
   0x3   :  { %v804_v7 = vpack.c.bf16 %v70_v4, %v69_v1  ;;  %v46_v8 = vld [vmem:[%s1200_s3] sm:$0xff]  ;;  %803 = vmatprep.subr.bf16.mxu0 %v916_v10  ;;  %815 = vmatprep.subr.bf16.mxu1 %v916_v10  ;;  %v48_v12 = vld [vmem:[%s1200_s3 + $0x10] sm:$0xff]  ;;  %v49_v13 = vld [vmem:[%s1200_s3 + $0x18] sm:$0xff]  ;;  %v807_v14 = vpack.c.bf16 %v72_v6, %v71_v5 }
   0x4   :  { %v816_v11 = vpack.c.bf16 %v47_v9, %v46_v8  ;;  %v73_v15 = vld [vmem:[%s1200_s3 + $0x60] sm:$0xff]  ;;  %v74_v16 = vld [vmem:[%s1200_s3 + $0x68] sm:$0xff]  ;;  %v819_v17 = vpack.c.bf16 %v49_v13, %v48_v12 }
   0x5   :  { %805 = vmatpush3.bf16.msra.mxu0 %v804_v7  ;;  %v50_v20 = vld [vmem:[%s1200_s3 + $0x20] sm:$0xff]  ;;  %v51_v21 = vld [vmem:[%s1200_s3 + $0x28] sm:$0xff] }
   0x6   :  { %806 = vmatprep.subr.bf16.mxu0 %v916_v10  ;;  %817 = vmatpush3.bf16.msra.mxu1 %v816_v11 }
   0x7   :  { %885 = vset.pattern.permute.xlu0 %v917_v18  ;;  %887 = vset.pattern.permute.xlu1 %v918_v19 }
   0x8   :  { %12 = vsyncpa [#allocation3], 0  ;;  %32 = vperm.xlu0 %885, %v27_v0   ;;  %322 = vperm.xlu1 %887, %v27_v0   ;;  %v810_v22 = vpack.c.bf16 %v74_v16, %v73_v15  ;;  %v75_v23 = vld [vmem:[%s1200_s3 + $0x70] sm:$0xff]  ;;  %v76_v24 = vld [vmem:[%s1200_s3 + $0x78] sm:$0xff]  ;;  %v822_v25 = vpack.c.bf16 %v51_v21, %v50_v20  ;;  %vm919_vm0 = vmmov 0   ;;  %v920_v26 = vmov 0.0  }
   0x9   :  { %808 = vmatpush3.bf16.msra.mxu0 %v807_v14  ;;  %818 = vmatprep.subr.bf16.mxu1 %v916_v10  ;;  %v52_v27 = vld [vmem:[%s1200_s3 + $0x30] sm:$0xff]  ;;  %v53_v28 = vld [vmem:[%s1200_s3 + $0x38] sm:$0xff]  ;;  %v921_v29 = vmov 4   ;;  %v813_v30 = vpack.c.bf16 %v76_v24, %v75_v23  ;;  %v35_v32 = vlaneseq  ;;  %v1034_v35 = vld [vmem:[%s1198_s1] sm:$0x1f]  ;;  %vm77_vm1 = vcmask 523264  }
   0xa   :  { %809 = vmatprep.subr.bf16.mxu0 %v916_v10  ;;  %820 = vmatpush3.bf16.msra.mxu1 %v819_v17  ;;  %v825_v31 = vpack.c.bf16 %v53_v28, %v52_v27  ;;  %v1039_v36 = vld [vmem:[%s1199_s2] sm:$0x1f]  ;;  %v240_v43 = vld [vmem:[%s1200_s3 + $0x88] sm:$0xff]  ;;  %v241_v51 = vld [vmem:[%s1200_s3 + $0x90] sm:$0xff]  ;;  %s922_s26 = smov [#allocation2]  }
   0xb   :  { %821 = vmatprep.subr.bf16.mxu1 %v916_v10  ;;  %705 = vmatprep.mubr.msk.f32.mxu0 %vm919_vm0, %v920_v26  ;;  %v1028_v33 = vshrl.u32 %v35_v32, 7  ;;  %v239_v42 = vld [vmem:[%s1200_s3 + $0x80] sm:$0xff]  ;;  %v242_v52 = vld [vmem:[%s1200_s3 + $0x98] sm:$0xff]  ;;  %v337_v55 = vld [vmem:[%s1200_s3 + $0xc8] sm:$0xff]  ;;  %s619_s27 = sshll.u32 %s922_s26, 4  ;;  %s620_s27 = int_to_ptr.vmem [resolvable:$true] %s619_s27 }
   0xc   :  { %888 = vset.pattern.permute.xlu1 %v921_v29  ;;  %724 = vmatprep.mubr.msk.f32.mxu1 %vm919_vm0, %v920_v26  ;;  %v828_v48 = vpack.c.bf16 %v240_v43, %v239_v42  ;;  %v336_v54 = vld [vmem:[%s1200_s3 + $0xc0] sm:$0xff]  ;;  %v831_v59 = vpack.c.bf16 %v242_v52, %v241_v51  ;;  %v244_v63 = vld [vmem:[%s1200_s3 + $0xa8] sm:$0xff]  ;;  %v338_v1 = vld [vmem:[%s1200_s3 + $0xd0] sm:$0xff]  ;;  %s890_s28 = scalar_lea.vmem %s620_s27, 128  ;;  %p895_p1 = scmp.lt.s32.totalorder %s620_s27, %s620_s27 }
   0xd   :  { %419 = vperm.xlu1 %888, %v27_v0   ;;  %811 = vmatpush3.bf16.msra.mxu0 %v810_v22  ;;  %v60_v34 = vsub.s32 1, %v1028_v33  ;;  %v37_v38 = vsub.s32 0, %v1028_v33  ;;  %v230_v46 = vsub.s32 2, %v1028_v33  ;;  %v327_v60 = vsub.s32 3, %v1028_v33  ;;  %v243_v62 = vld [vmem:[%s1200_s3 + $0xa0] sm:$0xff]  ;;  %v339_v2 = vld [vmem:[%s1200_s3 + $0xd8] sm:$0xff]  ;;  %p891_p0 = scmp.ne.s32.totalorder %s620_s27, %s890_s28  ;;  %p896_p2 = scmp.lt.s32.totalorder %s890_s28, %s890_s28 }
   0xe   :  { %812 = vmatprep.subr.bf16.mxu0 %v916_v10  ;;  %823 = vmatpush3.bf16.msra.mxu1 %v822_v25  ;;  %v840_v61 = vpack.c.bf16 %v337_v55, %v336_v54  ;;  %v834_v5 = vpack.c.bf16 %v244_v63, %v243_v62  ;;  %v843_v7 = vpack.c.bf16 %v339_v2, %v338_v1  ;;  %v245_v8 = vld [vmem:[%s1200_s3 + $0xb0] sm:$0xff]  ;;  %v246_v9 = vld [vmem:[%s1200_s3 + $0xb8] sm:$0xff]  ;;  %v340_v12 = vld [vmem:[%s1200_s3 + $0xe0] sm:$0xff]  ;;  %v424_v24 = vsub.s32 4, %v1028_v33 }
   0xf   :  { %824 = vmatprep.subr.bf16.mxu1 %v916_v10  ;;  %889 = vset.pattern.permute.xlu0 %v921_v29  ;;  %v61_v37 = vrot.slane %v1034_v35, %v60_v34  ;;  %v66_v39 = vrot.slane %v1039_v36, %v60_v34  ;;  %v38_v44 = vrot.slane %v1034_v35, %v37_v38  ;;  %v341_v13 = vld [vmem:[%s1200_s3 + $0xe8] sm:$0xff]  ;;  %v433_v19 = vld [vmem:[%s1200_s3 + $0x100] sm:$0xff]  ;;  %v342_v21 = vld [vmem:[%s1200_s3 + $0xf0] sm:$0xff]  ;;  %p897_p3 = por %p896_p2, %p895_p1 }
  0x10   :  { %v43_v47 = vrot.slane %v1039_v36, %v37_v38  ;;  %v231_v56 = vrot.slane %v1034_v35, %v230_v46  ;;  %v236_v3 = vrot.slane %v1039_v36, %v230_v46  ;;  %v328_v6 = vrot.slane %v1034_v35, %v327_v60  ;;  %v434_v20 = vld [vmem:[%s1200_s3 + $0x108] sm:$0xff]  ;;  %v343_v22 = vld [vmem:[%s1200_s3 + $0xf8] sm:$0xff]  ;;  %v435_v29 = vld [vmem:[%s1200_s3 + $0x110] sm:$0xff] }
  0x11   :  { %814 = vmatpush3.bf16.msra.mxu0 %v813_v30  ;;  %v837_v15 = vpack.c.bf16 %v246_v9, %v245_v8  ;;  %v333_v16 = vrot.slane %v1039_v36, %v327_v60  ;;  %v846_v18 = vpack.c.bf16 %v341_v13, %v340_v12  ;;  %v852_v27 = vpack.c.bf16 %v434_v20, %v433_v19  ;;  %v436_v30 = vld [vmem:[%s1200_s3 + $0x118] sm:$0xff]  ;;  %v438_v38 = vld [vmem:[%s1200_s3 + $0x128] sm:$0xff]  ;;  %v633_v8 = vld [vmem:[%s1203_s6] ss:$0 sm:$0xff]  ;;  %p898_p4 = pnand %p897_p3, %p891_p0 }
  0x12   :  { %827 = vmatprep.subr.bf16.mxu0 %v916_v10  ;;  %826 = vmatpush3.bf16.msra.mxu1 %v825_v31  ;;  %v849_v28 = vpack.c.bf16 %v343_v22, %v342_v21  ;;  %v425_v31 = vrot.slane %v1034_v35, %v424_v24  ;;  %v855_v33 = vpack.c.bf16 %v436_v30, %v435_v29  ;;  %v440_v42 = vld [vmem:[%s1200_s3 + $0x138] sm:$0xff]  ;;  %v525_v46 = vld [vmem:[%s1202_s5 + $0x8] sm:$0xff] }
  0x13   :  { %839 = vmatprep.subr.bf16.mxu1 %v916_v10  ;;  %v430_v35 = vrot.slane %v1039_v36, %v424_v24  ;;  %v529_v51 = vld [vmem:[%s1202_s5 + $0x28] sm:$0xff]  ;;  %v531_v54 = vld [vmem:[%s1202_s5 + $0x38] sm:$0xff] }
  0x81   :  { %v56_v40 = vpop.permute.xlu0 %55  ;;  %v226_v57 = vpop.permute.xlu1 %225 }
  0x82   :  { %v62_v41 = vmul.f32 %v61_v37, %v56_v40  ;;  %v232_v4 = vmul.f32 %v231_v56, %v226_v57  ;;  %v437_v37 = vld [vmem:[%s1200_s3 + $0x120] sm:$0xff] }
  0x83   :  { %v858_v40 = vpack.c.bf16 %v438_v38, %v437_v37 }
  0x84   :  { %v67_v45 = vadd.f32 %v66_v39, %v62_v41  ;;  %v237_v14 = vadd.f32 %v236_v3, %v232_v4  ;;  %v439_v41 = vld [vmem:[%s1200_s3 + $0x130] sm:$0xff]  ;;  %v632_v3 = vld [vmem:[%s1201_s4] ss:$0 sm:$0xff] }
  0x85   :  { %v861_v36 = vpack.c.bf16 %v440_v42, %v439_v41 }
  0x86   :  { %v68_v49 = vmax.f32 %v67_v45, 0.0  ;;  %v238_v23 = vmax.f32 %v237_v14, 0.0  ;;  %v524_v45 = vld [vmem:[%s1202_s5] sm:$0xff] }
  0x87   :  { %v33_v50 = vpop.permute.xlu0 %32  ;;  %v323_v11 = vpop.permute.xlu1 %322 }
  0x88   :  { %v39_v53 = vmul.f32 %v38_v44, %v33_v50  ;;  %706 = vmatmul.mubr.msk.f32.vlgmr.msra.gmra.mrb[0].mxu0 %vm77_vm1, %v68_v49  ;;  %v329_v17 = vmul.f32 %v328_v6, %v323_v11  ;;  %v528_v50 = vld [vmem:[%s1202_s5 + $0x20] sm:$0xff] }
  0x89   :  { %829 = vmatpush3.bf16.msra.mxu0 %v828_v48  ;;  %743 = vmatprep.mubr.msk.f32.mxu0 %vm919_vm0, %v920_v26  ;;  %v527_v48 = vld [vmem:[%s1202_s5 + $0x18] sm:$0xff]  ;;  %v870_v52 = vpack.c.bf16 %v529_v51, %v528_v50 }
  0x8a   :  { %v44_v58 = vadd.f32 %v43_v47, %v39_v53  ;;  %830 = vmatprep.subr.bf16.mxu0 %v916_v10  ;;  %v334_v25 = vadd.f32 %v333_v16, %v329_v17  ;;  %v864_v47 = vpack.c.bf16 %v525_v46, %v524_v45  ;;  %v530_v53 = vld [vmem:[%s1202_s5 + $0x30] sm:$0xff] }
  0x8b   :  { %v873_v55 = vpack.c.bf16 %v531_v54, %v530_v53 }
  0x8c   :  { %v45_v0 = vmax.f32 %v44_v58, 0.0  ;;  %v335_v32 = vmax.f32 %v334_v25, 0.0  ;;  %v420_v34 = vpop.permute.xlu1 %419 }
  0x8d   :  { %832 = vmatpush3.bf16.msra.mxu0 %v831_v59  ;;  %v426_v39 = vmul.f32 %v425_v31, %v420_v34 }
  0x8e   :  { %725 = vmatmul.mubr.msk.f32.vlgmr.msra.gmra.mrb[0].mxu1 %vm77_vm1, %v45_v0  ;;  %833 = vmatprep.subr.bf16.mxu0 %v916_v10 }
  0x8f   :  { %841 = vmatpush3.bf16.msra.mxu1 %v840_v61  ;;  %762 = vmatprep.mubr.msk.f32.mxu1 %vm919_vm0, %v920_v26  ;;  %v431_v43 = vadd.f32 %v430_v35, %v426_v39 }
  0x90   :  { %842 = vmatprep.subr.bf16.mxu1 %v916_v10 }
  0x91   :  { %835 = vmatpush3.bf16.msra.mxu0 %v834_v5  ;;  %v432_v44 = vmax.f32 %v431_v43, 0.0 }
  0x92   :  { %836 = vmatprep.subr.bf16.mxu0 %v916_v10 }
  0x93   :  { %844 = vmatpush3.bf16.msra.mxu1 %v843_v7 }
  0x94   :  { %845 = vmatprep.subr.bf16.mxu1 %v916_v10 }
  0x95   :  { %838 = vmatpush3.bf16.msra.mxu0 %v837_v15 }
  0x96   :  { %851 = vmatprep.subr.bf16.mxu0 %v916_v10 }
  0x97   :  { %847 = vmatpush3.bf16.msra.mxu1 %v846_v18 }
  0x98   :  { %848 = vmatprep.subr.bf16.mxu1 %v916_v10  ;;  %744 = vmatmul.mubr.msk.f32.vlgmr.msra.gmra.mrb[2].mxu0 %vm77_vm1, %v238_v23 }
  0x99   :  { %853 = vmatpush3.bf16.msra.mxu0 %v852_v27  ;;  %781 = vmatprep.mubr.msk.f32.mxu0 %vm919_vm0, %v920_v26 }
  0x9a   :  { %854 = vmatprep.subr.bf16.mxu0 %v916_v10 }
  0x9b   :  { %850 = vmatpush3.bf16.msra.mxu1 %v849_v28 }
  0x9c   :  { %863 = vmatprep.subr.bf16.mxu1 %v916_v10 }
  0x9d   :  { %856 = vmatpush3.bf16.msra.mxu0 %v855_v33 }
  0x9e   :  { %763 = vmatmul.mubr.msk.f32.vlgmr.msra.gmra.mrb[2].mxu1 %vm77_vm1, %v335_v32  ;;  %857 = vmatprep.subr.bf16.mxu0 %v916_v10 }
  0x9f   :  { %800 = vmatprep.mubr.msk.f32.mxu1 %vm919_vm0, %v920_v26  ;;  %v526_v26 = vld [vmem:[%s1202_s5 + $0x10] sm:$0xff]  ;;  %865 = vmatpush3.bf16.msra.mxu1 %v864_v47 }
  0xa0   :  { %v867_v49 = vpack.c.bf16 %v527_v48, %v526_v26  ;;  %866 = vmatprep.subr.bf16.mxu1 %v916_v10 }
  0xa1   :  { %859 = vmatpush3.bf16.msra.mxu0 %v858_v40 }
  0xa2   :  { %860 = vmatprep.subr.bf16.mxu0 %v916_v10 }
  0xa3   :  { %868 = vmatpush3.bf16.msra.mxu1 %v867_v49 }
  0xa4   :  { %869 = vmatprep.subr.bf16.mxu1 %v916_v10 }
  0xa5   :  { %862 = vmatpush3.bf16.msra.mxu0 %v861_v36 }
  0xa7   :  { %871 = vmatpush3.bf16.msra.mxu1 %v870_v52 }
  0xa8   :  { %782 = vmatmul.mubr.msk.f32.vlgmr.msra.gmra.mrb[4].mxu0 %vm77_vm1, %v432_v44  ;;  %872 = vmatprep.subr.bf16.mxu1 %v916_v10 }
  0xab   :  { %874 = vmatpush3.bf16.msra.mxu1 %v873_v55 }
 0x15b   :  { %v147_v56 = vpop.f32.mrb[0].mxu0 }
 0x15c   :  { %v707_v57 = vpop.f32.mrb[1].mxu0 }
 0x161   :  { %v220_v58 = vpop.f32.mrb[0].mxu1 }
 0x162   :  { %v221_v59 = vadd.f32 %v220_v58, %v147_v56  ;;  %v726_v60 = vpop.f32.mrb[1].mxu1 }
 0x16b   :  { %v316_v61 = vpop.f32.mrb[2].mxu0 }
 0x16c   :  { %v320_v62 = vadd.f32 %v316_v61, %v221_v59  ;;  %v745_v63 = vpop.f32.mrb[3].mxu0 }
 0x171   :  { %v413_v0 = vpop.f32.mrb[2].mxu1 }
 0x172   :  { %v417_v10 = vadd.f32 %v413_v0, %v320_v62  ;;  %v764_v1 = vpop.f32.mrb[3].mxu1 }
 0x17b   :  { %v510_v2 = vpop.f32.mrb[4].mxu0 }
 0x17c   :  { %v514_v4 = vadd.f32 %v510_v2, %v417_v10  ;;  %v783_v5 = vpop.f32.mrb[5].mxu0 }
 0x17e   :  { %v522_v6 = vadd.f32 %v632_v3, %v514_v4 }
 0x180   :  { %v523_v7 = vmax.f32 %v522_v6, 0.0 }
 0x182   :  { %801 = vmatmul.mubr.msk.f32.vlgmr.msra.gmra.mrb[4].mxu1 %vm77_vm1, %v523_v7 }
 0x255   :  { %v608_v9 = vpop.f32.mrb[4].mxu1 }
 0x256   :  { %v609_v11 = vadd.f32 %v633_v8, %v608_v9  ;;  %v802_v12 = vpop.f32.mrb[5].mxu1 }
 0x258   :  { %612 = vst [vmem:[#allocation2] sm:$0xff] %v609_v11 }
 0x259   :  { %901 = shalt.err (!%p898_p4)
}
 0x25a   :  { %s902_s30 = scalar_lea.hbm %s1204_s7, 128 }
 0x25b   :  { %p903_p5 = scmp.ne.s32.totalorder %s1204_s7, %s902_s30  ;;  %p906_p6 = scmp.lt.u32.totalorder %s902_s30, %s1204_s7 }
 0x25d   :  { %p908_p7 = pnand %p906_p6, %p903_p5 }
 0x25f   :  { %911 = shalt.err (!%p908_p7)
}
 0x260   :  { %622 = dma.vmem_to_hbm [thread:$0]  %s620_s27, 128, %s1204_s7, [#allocation3]  }
 0x261   :  { %912 = dma.done.wait [#allocation3], 128  }
 0x262   :  { %913 = vsyncadd [#allocation3], 4294967168 }
 0x263   :  { %626 = vsyncpa [#allocation3], 1 }

</bundles_post_ra>
